<compile_context>
chip_gen: v6e
topology: v6e:2x2x1
jax: 0.10.0
libtpu: 0.0.40
codegen_flags: <defaults>
</compile_context>

<pallas_src>
import functools

import jax
import jax.numpy as jnp
from jax.experimental import pallas as pl
from jax.experimental.pallas import tpu as pltpu

_LANE = 128
_MAX_TILE_ROWS = 8192     # 8192 x 128 f32 = 4 MiB per input per pipeline buffer
_CHUNK_ROWS = 64          # inner-loop chunk: keeps live vregs well under 64
_NCORES = 2               # leading "parallel" grid axis (both TCs on v7x)
_PAD_LOGIT = -1.0e4       # sigmoid(-1e4) == 0 and log1p(exp(-1e4)) == 0 in f32
_VMEM_LIMIT = 32 * 1024 * 1024


def _tversky_bce_kernel(x_ref, t_ref, out_ref, *,
                        tile_rows, chunk_rows, steps, valid_rows):
    c = pl.program_id(0)
    s = pl.program_id(1)

    @pl.when(s == 0)
    def _init():
        out_ref[...] = jnp.zeros_like(out_ref)

    base_row = (c * steps + s) * tile_rows       # intended global row offset
    num_chunks = tile_rows // chunk_rows
    groups = chunk_rows // 8
    align = chunk_rows & -chunk_rows             # pow2 alignment hint for pl.ds

    def _fold(v):
        # (chunk_rows,128) -> (8,128) partial sums; pure VALU adds (reshape only
        # groups whole (8,128) vreg slabs, no data movement).
        return v.reshape(groups, 8, _LANE).sum(axis=0)

    def _make_body(masked):
        def body(i):
            r0 = pl.multiple_of(i * chunk_rows, align)
            x = x_ref[pl.ds(r0, chunk_rows), :].astype(jnp.float32)
            t = t_ref[pl.ds(r0, chunk_rows), :].astype(jnp.float32)
            if masked:
                # Rows at/after valid_rows hold unspecified data (partial or
                # clamped blocks); force them to the zero-contribution values.
                row = (base_row + r0 +
                       jax.lax.broadcasted_iota(jnp.int32, (chunk_rows, _LANE), 0))
                ok = row < valid_rows
                x = jnp.where(ok, x, _PAD_LOGIT)
                t = jnp.where(ok, t, 0.0)
            nonneg = x >= 0.0
            e = jnp.exp(-jnp.abs(x))                   # shared: sigmoid + BCE
            inv = pl.reciprocal(1.0 + e, approx=True)  # EUP vrcp
            p = jnp.where(nonneg, inv, e * inv)        # sigmoid(x)
            bce = jnp.where(nonneg, x, 0.0) - x * t + jnp.log1p(e)

            out_ref[0, 0:8, :] += _fold(p)             # sum_p
            out_ref[0, 8:16, :] += _fold(t)            # sum_t
            out_ref[0, 16:24, :] += _fold(p * t)       # sum_pt (= TP)
            out_ref[0, 24:32, :] += _fold(bce)         # sum_bce
        return body

    tile_full = base_row + tile_rows <= valid_rows

    @pl.when(tile_full)
    def _fast():                                   # hot path: no mask ops
        pl.loop(0, num_chunks)(_make_body(False))

    @pl.when(jnp.logical_not(tile_full))
    def _ragged():                                 # last / clamped blocks only
        pl.loop(0, num_chunks)(_make_body(True))


def tversky_bce_loss(inputs, targets, *, alpha=0.5, beta=0.5, smooth=1.0):
    """0.8 * TverskyLoss + 0.2 * BCEWithLogitsLoss over all elements."""
    n = int(inputs.size)
    x = inputs.reshape(-1)                 # native dtype (bf16 stays bf16)
    t = targets.reshape(-1)                # native dtype (no f32 up-cast)
    if t.dtype == jnp.bool_:
        t = t.astype(jnp.int8)             # 1 B/elem on the wire

    # Only a sub-row pad (<=127 elements) when numel isn't a multiple of 128;
    # all block-level raggedness is masked inside the kernel instead.
    rem = (-n) % _LANE
    if rem:
        x = jnp.pad(x, (0, rem), constant_values=_PAD_LOGIT)
        t = jnp.pad(t, (0, rem))
    rows = (n + rem) // _LANE

    # Minimum sublane granularity per dtype (f32: 8, bf16: 16, int8/bool: 32).
    def _min_rows(dt):
        return max(8, 32 // jnp.dtype(dt).itemsize)

    sub = max(_min_rows(x.dtype), _min_rows(t.dtype))

    rows_per_core = -(-rows // _NCORES)
    if rows_per_core >= _CHUNK_ROWS:
        chunk = _CHUNK_ROWS                               # multiple of any sub
        tile_rows = min(_MAX_TILE_ROWS, -(-rows_per_core // chunk) * chunk)
    else:
        tile_rows = -(-rows_per_core // sub) * sub        # tiny input
        chunk = tile_rows
    steps = -(-rows_per_core // tile_rows)
    nblocks = -(-rows // tile_rows)        # blocks actually present in the array

    x2 = x.reshape(rows, _LANE)
    t2 = t.reshape(rows, _LANE)

    kernel = functools.partial(_tversky_bce_kernel, tile_rows=tile_rows,
                               chunk_rows=chunk, steps=steps, valid_rows=rows)

    # Clamp block index so no block starts fully out of bounds; the kernel's
    # row mask (computed from the *intended* offset) zeroes any duplicate read.
    def row_block(c, s):
        return (jnp.minimum(c * steps + s, nblocks - 1), 0)

    in_spec = pl.BlockSpec((tile_rows, _LANE), row_block)

    partials = pl.pallas_call(
        kernel,
        out_shape=jax.ShapeDtypeStruct((_NCORES, 32, _LANE), jnp.float32),
        grid_spec=pltpu.PrefetchScalarGridSpec(
            num_scalar_prefetch=0,
            grid=(_NCORES, steps),
            in_specs=[in_spec, in_spec],
            out_specs=pl.BlockSpec((1, 32, _LANE), lambda c, s: (c, 0, 0)),
        ),
        compiler_params=pltpu.CompilerParams(
            dimension_semantics=("parallel", "arbitrary"),
            vmem_limit_bytes=_VMEM_LIMIT),
    )(x2, t2)

    # Tiny final reduction + loss combine in plain JAX (a few KiB of data).
    stats = partials.reshape(_NCORES, 4, 8 * _LANE).sum(axis=(0, 2))   # (4,)
    sum_p, sum_t, sum_pt, sum_bce = stats[0], stats[1], stats[2], stats[3]

    tp = sum_pt
    fp = sum_p - sum_pt
    fn = sum_t - sum_pt
    tversky = (tp + smooth) / (tp + alpha * fp + beta * fn + smooth)
    tversky_loss = 1.0 - tversky
    bce_loss = sum_bce / n
    return 0.8 * tversky_loss + 0.2 * bce_loss


def _reference_loss(inputs, targets, *, alpha=0.5, beta=0.5, smooth=1.0):
    x = inputs.reshape(-1).astype(jnp.float32)
    t = targets.reshape(-1).astype(jnp.float32)
    p = jax.nn.sigmoid(x)
    tp = jnp.sum(p * t)
    fp = jnp.sum(p * (1.0 - t))
    fn = jnp.sum((1.0 - p) * t)
    tversky = (tp + smooth) / (tp + alpha * fp + beta * fn + smooth)
    bce = jnp.mean(jnp.maximum(x, 0.0) - x * t + jnp.log1p(jnp.exp(-jnp.abs(x))))
    return 0.8 * (1.0 - tversky) + 0.2 * bce


if __name__ == "__main__":
    key = jax.random.PRNGKey(0)
    k_x, k_t = jax.random.split(key)

    # Segmentation-style logits / binary targets, NCHW.
    N, C, H, W = 2, 4, 16, 16
    inputs = jax.random.normal(k_x, (N, C, H, W), dtype=jnp.float32)
    targets = jax.random.bernoulli(k_t, p=0.3, shape=(N, C, H, W)).astype(jnp.float32)

    loss = tversky_bce_loss(inputs, targets)
    loss = jax.block_until_ready(loss)

    ref = _reference_loss(inputs, targets)
    # Tolerance loosened (3e-3) because the sigmoid uses the approximate EUP
    # reciprocal (pl.reciprocal(approx=True)); BCE term is unaffected.
    if not jnp.allclose(loss, ref, rtol=3e-3, atol=3e-3):
        raise AssertionError(f"mismatch: kernel={loss} ref={ref}")

    print("KERNEL_OK")
</pallas_src>

<mosaic_0001>
module attributes {stable_mosaic.version = 11 : i64} {
  func.func @_tversky_bce_kernel(%arg0: i32, %arg1: i32, %arg2: memref<8x128xf32, #tpu.memory_space<vmem>>, %arg3: memref<8x128xf32, #tpu.memory_space<vmem>>, %arg4: memref<1x32x128xf32, #tpu.memory_space<vmem>>) attributes {dimension_semantics = [#tpu.dimension_semantics<parallel>, #tpu.dimension_semantics<arbitrary>], iteration_bounds = array<i64: 2, 1>, scalar_prefetch = 0 : i64, scratch_operands = 0 : i64, tpu.core_type = #tpu.core_type<tc>, window_params = [{transform_indices = @transform_0, window_bounds = array<i64: 8, 128>}, {transform_indices = @transform_1, window_bounds = array<i64: 8, 128>}, {transform_indices = @transform_2, window_bounds = array<i64: 1, 32, 128>}]} {
    %c0_i32 = arith.constant 0 : i32
    %0 = arith.cmpi eq, %arg1, %c0_i32 : i32
    %1 = arith.extui %0 : i1 to i32
    %c0_i32_0 = arith.constant 0 : i32
    %2 = arith.cmpi ne, %1, %c0_i32_0 : i32
    scf.if %2 {
      %cst = arith.constant 0.000000e+00 : f32
      %13 = vector.broadcast %cst : f32 to vector<1x32x128xf32>
      %c0 = arith.constant 0 : index
      %c0_4 = arith.constant 0 : index
      %c0_5 = arith.constant 0 : index
      %14 = vector.load %arg4[%c0, %c0_4, %c0_5] : memref<1x32x128xf32, #tpu.memory_space<vmem>>, vector<1x32x128xf32>
      tpu.vector_store %arg4[%c0, %c0_4, %c0_5], %13 {strides = array<i32>} : memref<1x32x128xf32, #tpu.memory_space<vmem>>, vector<1x32x128xf32>,
    } else {
    }
    %c1_i32 = arith.constant 1 : i32
    %3 = arith.muli %arg0, %c1_i32 : i32
    %4 = arith.addi %3, %arg1 : i32
    %c8_i32 = arith.constant 8 : i32
    %5 = arith.muli %4, %c8_i32 : i32
    %c8_i32_1 = arith.constant 8 : i32
    %6 = arith.addi %5, %c8_i32_1 : i32
    %c16_i32 = arith.constant 16 : i32
    %7 = arith.cmpi sle, %6, %c16_i32 : i32
    %8 = arith.extui %7 : i1 to i32
    %c0_i32_2 = arith.constant 0 : i32
    %9 = arith.cmpi ne, %8, %c0_i32_2 : i32
    scf.if %9 {
      %c0_i32_4 = arith.constant 0 : i32
      %c1_i32_5 = arith.constant 1 : i32
      %13 = arith.muli %c0_i32_4, %c1_i32_5 : i32
      %c0_i32_6 = arith.constant 0 : i32
      %14 = arith.addi %c0_i32_6, %13 : i32
      %c8_i32_7 = arith.constant 8 : i32
      %15 = arith.muli %14, %c8_i32_7 : i32
      %16 = tpu.assume_multiple %15, 8 : i32
      %17 = arith.index_cast %16 : i32 to index
      %c0 = arith.constant 0 : index
      %18 = vector.load %arg2[%17, %c0] : memref<8x128xf32, #tpu.memory_space<vmem>>, vector<8x128xf32>
      %19 = arith.index_cast %16 : i32 to index
      %c0_8 = arith.constant 0 : index
      %20 = vector.load %arg3[%19, %c0_8] : memref<8x128xf32, #tpu.memory_space<vmem>>, vector<8x128xf32>
      %cst = arith.constant 0.000000e+00 : f32
      %21 = vector.broadcast %cst : f32 to vector<8x128xf32>
      %22 = arith.cmpf oge, %18, %21 : vector<8x128xf32>
      %23 = math.absf %18 : vector<8x128xf32>
      %cst_9 = arith.constant 0.000000e+00 : f32
      %24 = vector.broadcast %cst_9 : f32 to vector<8x128xf32>
      %25 = arith.subf %24, %23 : vector<8x128xf32>
      %26 = math.exp %25 : vector<8x128xf32>
      %cst_10 = arith.constant 1.000000e+00 : f32
      %27 = vector.broadcast %cst_10 : f32 to vector<8x128xf32>
      %28 = arith.addf %27, %26 : vector<8x128xf32>
      %29 = tpu.reciprocal %28 {approx = true} : vector<8x128xf32> -> vector<8x128xf32>
      %30 = arith.mulf %26, %29 : vector<8x128xf32>
      %31 = arith.select %22, %29, %30 : vector<8x128xi1>, vector<8x128xf32>
      %cst_11 = arith.constant 0.000000e+00 : f32
      %32 = vector.broadcast %cst_11 : f32 to vector<8x128xf32>
      %33 = arith.select %22, %18, %32 : vector<8x128xi1>, vector<8x128xf32>
      %34 = arith.mulf %18, %20 : vector<8x128xf32>
      %35 = arith.subf %33, %34 : vector<8x128xf32>
      %36 = math.log1p %26 : vector<8x128xf32>
      %37 = arith.addf %35, %36 : vector<8x128xf32>
      %c0_12 = arith.constant 0 : index
      %c0_13 = arith.constant 0 : index
      %c0_14 = arith.constant 0 : index
      %38 = vector.load %arg4[%c0_12, %c0_13, %c0_14] : memref<1x32x128xf32, #tpu.memory_space<vmem>>, vector<1x8x128xf32>
      %39 = vector.shape_cast %38 : vector<1x8x128xf32> to vector<8x128xf32>
      %40 = vector.shape_cast %31 : vector<8x128xf32> to vector<1x8x128xf32>
      %cst_15 = arith.constant dense<0.000000e+00> : vector<8x128xf32>
      %41 = vector.multi_reduction <add>, %40, %cst_15 [0] : vector<1x8x128xf32> to vector<8x128xf32>
      %42 = arith.addf %39, %41 : vector<8x128xf32>
      %c0_16 = arith.constant 0 : index
      %c0_17 = arith.constant 0 : index
      %c0_18 = arith.constant 0 : index
      %43 = vector.load %arg4[%c0_16, %c0_17, %c0_18] : memref<1x32x128xf32, #tpu.memory_space<vmem>>, vector<1x8x128xf32>
      %44 = vector.shape_cast %43 : vector<1x8x128xf32> to vector<8x128xf32>
      %45 = vector.shape_cast %42 : vector<8x128xf32> to vector<1x8x128xf32>
      tpu.vector_store %arg4[%c0_16, %c0_17, %c0_18], %45 {strides = array<i32>} : memref<1x32x128xf32, #tpu.memory_space<vmem>>, vector<1x8x128xf32>,
      %c0_19 = arith.constant 0 : index
      %c8 = arith.constant 8 : index
      %c0_20 = arith.constant 0 : index
      %46 = vector.load %arg4[%c0_19, %c8, %c0_20] : memref<1x32x128xf32, #tpu.memory_space<vmem>>, vector<1x8x128xf32>
      %47 = vector.shape_cast %46 : vector<1x8x128xf32> to vector<8x128xf32>
      %48 = vector.shape_cast %20 : vector<8x128xf32> to vector<1x8x128xf32>
      %cst_21 = arith.constant dense<0.000000e+00> : vector<8x128xf32>
      %49 = vector.multi_reduction <add>, %48, %cst_21 [0] : vector<1x8x128xf32> to vector<8x128xf32>
      %50 = arith.addf %47, %49 : vector<8x128xf32>
      %c0_22 = arith.constant 0 : index
      %c8_23 = arith.constant 8 : index
      %c0_24 = arith.constant 0 : index
      %51 = vector.load %arg4[%c0_22, %c8_23, %c0_24] : memref<1x32x128xf32, #tpu.memory_space<vmem>>, vector<1x8x128xf32>
      %52 = vector.shape_cast %51 : vector<1x8x128xf32> to vector<8x128xf32>
      %53 = vector.shape_cast %50 : vector<8x128xf32> to vector<1x8x128xf32>
      tpu.vector_store %arg4[%c0_22, %c8_23, %c0_24], %53 {strides = array<i32>} : memref<1x32x128xf32, #tpu.memory_space<vmem>>, vector<1x8x128xf32>,
      %c0_25 = arith.constant 0 : index
      %c16 = arith.constant 16 : index
      %c0_26 = arith.constant 0 : index
      %54 = vector.load %arg4[%c0_25, %c16, %c0_26] : memref<1x32x128xf32, #tpu.memory_space<vmem>>, vector<1x8x128xf32>
      %55 = vector.shape_cast %54 : vector<1x8x128xf32> to vector<8x128xf32>
      %56 = arith.mulf %31, %20 : vector<8x128xf32>
      %57 = vector.shape_cast %56 : vector<8x128xf32> to vector<1x8x128xf32>
      %cst_27 = arith.constant dense<0.000000e+00> : vector<8x128xf32>
      %58 = vector.multi_reduction <add>, %57, %cst_27 [0] : vector<1x8x128xf32> to vector<8x128xf32>
      %59 = arith.addf %55, %58 : vector<8x128xf32>
      %c0_28 = arith.constant 0 : index
      %c16_29 = arith.constant 16 : index
      %c0_30 = arith.constant 0 : index
      %60 = vector.load %arg4[%c0_28, %c16_29, %c0_30] : memref<1x32x128xf32, #tpu.memory_space<vmem>>, vector<1x8x128xf32>
      %61 = vector.shape_cast %60 : vector<1x8x128xf32> to vector<8x128xf32>
      %62 = vector.shape_cast %59 : vector<8x128xf32> to vector<1x8x128xf32>
      tpu.vector_store %arg4[%c0_28, %c16_29, %c0_30], %62 {strides = array<i32>} : memref<1x32x128xf32, #tpu.memory_space<vmem>>, vector<1x8x128xf32>,
      %c0_31 = arith.constant 0 : index
      %c24 = arith.constant 24 : index
      %c0_32 = arith.constant 0 : index
      %63 = vector.load %arg4[%c0_31, %c24, %c0_32] : memref<1x32x128xf32, #tpu.memory_space<vmem>>, vector<1x8x128xf32>
      %64 = vector.shape_cast %63 : vector<1x8x128xf32> to vector<8x128xf32>
      %65 = vector.shape_cast %37 : vector<8x128xf32> to vector<1x8x128xf32>
      %cst_33 = arith.constant dense<0.000000e+00> : vector<8x128xf32>
      %66 = vector.multi_reduction <add>, %65, %cst_33 [0] : vector<1x8x128xf32> to vector<8x128xf32>
      %67 = arith.addf %64, %66 : vector<8x128xf32>
      %c0_34 = arith.constant 0 : index
      %c24_35 = arith.constant 24 : index
      %c0_36 = arith.constant 0 : index
      %68 = vector.load %arg4[%c0_34, %c24_35, %c0_36] : memref<1x32x128xf32, #tpu.memory_space<vmem>>, vector<1x8x128xf32>
      %69 = vector.shape_cast %68 : vector<1x8x128xf32> to vector<8x128xf32>
      %70 = vector.shape_cast %67 : vector<8x128xf32> to vector<1x8x128xf32>
      tpu.vector_store %arg4[%c0_34, %c24_35, %c0_36], %70 {strides = array<i32>} : memref<1x32x128xf32, #tpu.memory_space<vmem>>, vector<1x8x128xf32>,
      %c1_i32_37 = arith.constant 1 : i32
    } else {
    }
    %true = arith.constant true
    %10 = arith.xori %7, %true : i1
    %11 = arith.extui %10 : i1 to i32
    %c0_i32_3 = arith.constant 0 : i32
    %12 = arith.cmpi ne, %11, %c0_i32_3 : i32
    scf.if %12 {
      %c0_i32_4 = arith.constant 0 : i32
      %c1_i32_5 = arith.constant 1 : i32
      %13 = arith.muli %c0_i32_4, %c1_i32_5 : i32
      %c0_i32_6 = arith.constant 0 : i32
      %14 = arith.addi %c0_i32_6, %13 : i32
      %c8_i32_7 = arith.constant 8 : i32
      %15 = arith.muli %14, %c8_i32_7 : i32
      %16 = tpu.assume_multiple %15, 8 : i32
      %17 = arith.index_cast %16 : i32 to index
      %c0 = arith.constant 0 : index
      %18 = vector.load %arg2[%17, %c0] : memref<8x128xf32, #tpu.memory_space<vmem>>, vector<8x128xf32>
      %19 = arith.index_cast %16 : i32 to index
      %c0_8 = arith.constant 0 : index
      %20 = vector.load %arg3[%19, %c0_8] : memref<8x128xf32, #tpu.memory_space<vmem>>, vector<8x128xf32>
      %21 = arith.addi %5, %16 : i32
      %22 = tpu.iota {dimensions = array<i32: 0>} : vector<8x128xi32>
      %23 = vector.broadcast %21 : i32 to vector<8x128xi32>
      %24 = arith.addi %23, %22 : vector<8x128xi32>
      %c16_i32_9 = arith.constant 16 : i32
      %25 = vector.broadcast %c16_i32_9 : i32 to vector<8x128xi32>
      %26 = arith.cmpi slt, %24, %25 : vector<8x128xi32>
      %cst = arith.constant -1.000000e+04 : f32
      %27 = vector.broadcast %cst : f32 to vector<8x128xf32>
      %28 = arith.select %26, %18, %27 : vector<8x128xi1>, vector<8x128xf32>
      %cst_10 = arith.constant 0.000000e+00 : f32
      %29 = vector.broadcast %cst_10 : f32 to vector<8x128xf32>
      %30 = arith.select %26, %20, %29 : vector<8x128xi1>, vector<8x128xf32>
      %cst_11 = arith.constant 0.000000e+00 : f32
      %31 = vector.broadcast %cst_11 : f32 to vector<8x128xf32>
      %32 = arith.cmpf oge, %28, %31 : vector<8x128xf32>
      %33 = math.absf %28 : vector<8x128xf32>
      %cst_12 = arith.constant 0.000000e+00 : f32
      %34 = vector.broadcast %cst_12 : f32 to vector<8x128xf32>
      %35 = arith.subf %34, %33 : vector<8x128xf32>
      %36 = math.exp %35 : vector<8x128xf32>
      %cst_13 = arith.constant 1.000000e+00 : f32
      %37 = vector.broadcast %cst_13 : f32 to vector<8x128xf32>
      %38 = arith.addf %37, %36 : vector<8x128xf32>
      %39 = tpu.reciprocal %38 {approx = true} : vector<8x128xf32> -> vector<8x128xf32>
      %40 = arith.mulf %36, %39 : vector<8x128xf32>
      %41 = arith.select %32, %39, %40 : vector<8x128xi1>, vector<8x128xf32>
      %cst_14 = arith.constant 0.000000e+00 : f32
      %42 = vector.broadcast %cst_14 : f32 to vector<8x128xf32>
      %43 = arith.select %32, %28, %42 : vector<8x128xi1>, vector<8x128xf32>
      %44 = arith.mulf %28, %30 : vector<8x128xf32>
      %45 = arith.subf %43, %44 : vector<8x128xf32>
      %46 = math.log1p %36 : vector<8x128xf32>
      %47 = arith.addf %45, %46 : vector<8x128xf32>
      %c0_15 = arith.constant 0 : index
      %c0_16 = arith.constant 0 : index
      %c0_17 = arith.constant 0 : index
      %48 = vector.load %arg4[%c0_15, %c0_16, %c0_17] : memref<1x32x128xf32, #tpu.memory_space<vmem>>, vector<1x8x128xf32>
      %49 = vector.shape_cast %48 : vector<1x8x128xf32> to vector<8x128xf32>
      %50 = vector.shape_cast %41 : vector<8x128xf32> to vector<1x8x128xf32>
      %cst_18 = arith.constant dense<0.000000e+00> : vector<8x128xf32>
      %51 = vector.multi_reduction <add>, %50, %cst_18 [0] : vector<1x8x128xf32> to vector<8x128xf32>
      %52 = arith.addf %49, %51 : vector<8x128xf32>
      %c0_19 = arith.constant 0 : index
      %c0_20 = arith.constant 0 : index
      %c0_21 = arith.constant 0 : index
      %53 = vector.load %arg4[%c0_19, %c0_20, %c0_21] : memref<1x32x128xf32, #tpu.memory_space<vmem>>, vector<1x8x128xf32>
      %54 = vector.shape_cast %53 : vector<1x8x128xf32> to vector<8x128xf32>
      %55 = vector.shape_cast %52 : vector<8x128xf32> to vector<1x8x128xf32>
      tpu.vector_store %arg4[%c0_19, %c0_20, %c0_21], %55 {strides = array<i32>} : memref<1x32x128xf32, #tpu.memory_space<vmem>>, vector<1x8x128xf32>,
      %c0_22 = arith.constant 0 : index
      %c8 = arith.constant 8 : index
      %c0_23 = arith.constant 0 : index
      %56 = vector.load %arg4[%c0_22, %c8, %c0_23] : memref<1x32x128xf32, #tpu.memory_space<vmem>>, vector<1x8x128xf32>
      %57 = vector.shape_cast %56 : vector<1x8x128xf32> to vector<8x128xf32>
      %58 = vector.shape_cast %30 : vector<8x128xf32> to vector<1x8x128xf32>
      %cst_24 = arith.constant dense<0.000000e+00> : vector<8x128xf32>
      %59 = vector.multi_reduction <add>, %58, %cst_24 [0] : vector<1x8x128xf32> to vector<8x128xf32>
      %60 = arith.addf %57, %59 : vector<8x128xf32>
      %c0_25 = arith.constant 0 : index
      %c8_26 = arith.constant 8 : index
      %c0_27 = arith.constant 0 : index
      %61 = vector.load %arg4[%c0_25, %c8_26, %c0_27] : memref<1x32x128xf32, #tpu.memory_space<vmem>>, vector<1x8x128xf32>
      %62 = vector.shape_cast %61 : vector<1x8x128xf32> to vector<8x128xf32>
      %63 = vector.shape_cast %60 : vector<8x128xf32> to vector<1x8x128xf32>
      tpu.vector_store %arg4[%c0_25, %c8_26, %c0_27], %63 {strides = array<i32>} : memref<1x32x128xf32, #tpu.memory_space<vmem>>, vector<1x8x128xf32>,
      %c0_28 = arith.constant 0 : index
      %c16 = arith.constant 16 : index
      %c0_29 = arith.constant 0 : index
      %64 = vector.load %arg4[%c0_28, %c16, %c0_29] : memref<1x32x128xf32, #tpu.memory_space<vmem>>, vector<1x8x128xf32>
      %65 = vector.shape_cast %64 : vector<1x8x128xf32> to vector<8x128xf32>
      %66 = arith.mulf %41, %30 : vector<8x128xf32>
      %67 = vector.shape_cast %66 : vector<8x128xf32> to vector<1x8x128xf32>
      %cst_30 = arith.constant dense<0.000000e+00> : vector<8x128xf32>
      %68 = vector.multi_reduction <add>, %67, %cst_30 [0] : vector<1x8x128xf32> to vector<8x128xf32>
      %69 = arith.addf %65, %68 : vector<8x128xf32>
      %c0_31 = arith.constant 0 : index
      %c16_32 = arith.constant 16 : index
      %c0_33 = arith.constant 0 : index
      %70 = vector.load %arg4[%c0_31, %c16_32, %c0_33] : memref<1x32x128xf32, #tpu.memory_space<vmem>>, vector<1x8x128xf32>
      %71 = vector.shape_cast %70 : vector<1x8x128xf32> to vector<8x128xf32>
      %72 = vector.shape_cast %69 : vector<8x128xf32> to vector<1x8x128xf32>
      tpu.vector_store %arg4[%c0_31, %c16_32, %c0_33], %72 {strides = array<i32>} : memref<1x32x128xf32, #tpu.memory_space<vmem>>, vector<1x8x128xf32>,
      %c0_34 = arith.constant 0 : index
      %c24 = arith.constant 24 : index
      %c0_35 = arith.constant 0 : index
      %73 = vector.load %arg4[%c0_34, %c24, %c0_35] : memref<1x32x128xf32, #tpu.memory_space<vmem>>, vector<1x8x128xf32>
      %74 = vector.shape_cast %73 : vector<1x8x128xf32> to vector<8x128xf32>
      %75 = vector.shape_cast %47 : vector<8x128xf32> to vector<1x8x128xf32>
      %cst_36 = arith.constant dense<0.000000e+00> : vector<8x128xf32>
      %76 = vector.multi_reduction <add>, %75, %cst_36 [0] : vector<1x8x128xf32> to vector<8x128xf32>
      %77 = arith.addf %74, %76 : vector<8x128xf32>
      %c0_37 = arith.constant 0 : index
      %c24_38 = arith.constant 24 : index
      %c0_39 = arith.constant 0 : index
      %78 = vector.load %arg4[%c0_37, %c24_38, %c0_39] : memref<1x32x128xf32, #tpu.memory_space<vmem>>, vector<1x8x128xf32>
      %79 = vector.shape_cast %78 : vector<1x8x128xf32> to vector<8x128xf32>
      %80 = vector.shape_cast %77 : vector<8x128xf32> to vector<1x8x128xf32>
      tpu.vector_store %arg4[%c0_37, %c24_38, %c0_39], %80 {strides = array<i32>} : memref<1x32x128xf32, #tpu.memory_space<vmem>>, vector<1x8x128xf32>,
      %c1_i32_40 = arith.constant 1 : i32
    } else {
    }
    return
  }
  func.func @transform_0(%arg0: i32, %arg1: i32) -> (i32, i32) {
    %c1_i32 = arith.constant 1 : i32
    %0 = arith.muli %arg0, %c1_i32 : i32
    %1 = arith.addi %0, %arg1 : i32
    %c1_i32_0 = arith.constant 1 : i32
    %2 = arith.minsi %1, %c1_i32_0 : i32
    %c0_i32 = arith.constant 0 : i32
    %c0_i32_1 = arith.constant 0 : i32
    return %2, %c0_i32 : i32, i32
  }
  func.func @transform_1(%arg0: i32, %arg1: i32) -> (i32, i32) {
    %c1_i32 = arith.constant 1 : i32
    %0 = arith.muli %arg0, %c1_i32 : i32
    %1 = arith.addi %0, %arg1 : i32
    %c1_i32_0 = arith.constant 1 : i32
    %2 = arith.minsi %1, %c1_i32_0 : i32
    %c0_i32 = arith.constant 0 : i32
    %c0_i32_1 = arith.constant 0 : i32
    return %2, %c0_i32 : i32, i32
  }
  func.func @transform_2(%arg0: i32, %arg1: i32) -> (i32, i32, i32) {
    %c0_i32 = arith.constant 0 : i32
    %c0_i32_0 = arith.constant 0 : i32
    %c0_i32_1 = arith.constant 0 : i32
    return %arg0, %c0_i32, %c0_i32_0 : i32, i32, i32
  }
}

</mosaic_0001>

<bundles_post_ra>
// kernel: tpu_custom_call.1
= control target key start
LH: loop header
LB: loop body
LE: loop exit
PB: predicated region body
PF: predicated region fallthrough
CT: control target
= control target key end

     0   :  { %s1024_s0 = inlined_call_operand.hbm [shape: f32[16,128], index: 0, kind: input, shape index: {}]   ;;  %s1025_s1 = inlined_call_operand.hbm [shape: f32[16,128], index: 1, kind: input, shape index: {}]   ;;  %s1026_s2 = inlined_call_operand.hbm [shape: f32[2,32,128], index: 2, kind: output, shape index: {}]  }
   0x1   :  { %1027 = sst [smem:[#allocation11_spill]] %s1024_s0 }
   0x2   :  { %7 = vsyncpa [#allocation3], 0 }
   0x3   :  { %9 = vsyncpa [#allocation3 + $0x1], 0 }
   0x4   :  { %10 = vsyncpa [#allocation6], 0 }
   0x5   :  { %12 = vsyncpa [#allocation6 + $0x1], 0 }
   0x6   :  { %13 = vsyncpa [#allocation4], 0 }
   0x7   :  { %15 = vsyncpa [#allocation4 + $0x1], 0  ;;  %s773_s9 = smov 0   ;;  %s775_s10 = smov 0  }
   0x8   :  { %s777_s11 = smov 0   ;;  %s779_s12 = smov 0  }
   0x9   :  { %s781_s13 = smov 0   ;;  %s783_s14 = smov 0  }
   0xa   :  { %s785_s15 = smov 0   ;;  %s787_s16 = smov 0  }
   0xb   :  { %s789_s17 = smov 0  }
   0xc LB: > { %s459_s18 = sadd.s32 4294967295, %s750_s17   ;;  %s460_s19 = sadd.s32 4294967294, %s750_s17   ;;  %s750_s17 = sphi %s789_s17, %s21_s17   ;;  %s746_s16 = sphi %s787_s16, %s1043_s16   ;;  %s742_s15 = sphi %s785_s15, %s1042_s15   ;;  %s738_s14 = sphi %s783_s14, %s1041_s14   ;;  %s734_s13 = sphi %s781_s13, %s1040_s13   ;;  %s730_s12 = sphi %s779_s12, %s1039_s12   ;;  %s726_s11 = sphi %s777_s11, %s1038_s11   ;;  %s722_s10 = sphi %s775_s10, %s1037_s10   ;;  %s718_s9 = sphi %s773_s9, %s1036_s9  }
   0xd   : > { %s33_s20 = sadd.s32 1, %s746_s16  ;;  %p38_p0 = scmp.lt.s32.totalorder %s746_s16, 1 }
   0xe   : > { %p35_p1 = scmp.ge.s32.totalorder %s33_s20, 2  ;;  %s46_s21 = sadd.s32 1, %s738_s14 }
   0xf   : > { %s822_s22 = scalar_select %p38_p0, %s746_s16, 1 }
  0x10   : > { %s1045_s20 = smov (%p35_p1, %s33_s20), 0  ;;  %p53_p2 = scmp.ne.s32.totalorder %s738_s14, %s734_s13 }
  0x11   : > { %p54_p3 = scmp.eq.s32.totalorder %s750_s17, 0  ;;  %p41_p4 = scmp.lt.s32.totalorder %s1045_s20, 1 }
  0x12   : > { %p59_p5 = scmp.ne.s32.totalorder %s734_s13, %s730_s12  ;;  %p60_p7 = scmp.eq.s32.totalorder %s459_s18, 0 }
  0x13   : > { %p831_p6 = por %p54_p3, %p53_p2  ;;  %s101_s26 = ssub.s32 %s746_s16, %s1045_s20 }
  0x14   : > { %s42_s24 = scalar_select %p41_p4, %s1045_s20, 1 }
  0x15   : > { %p836_p8 = por %p60_p7, %p59_p5  ;;  %p102_p9 = scmp.eq.s32.totalorder %s101_s26, 0 }
  0x16   : > { %s43_s27 = ssub.s32 %s822_s22, %s42_s24  ;;  %s104_s28 = sadd.s32 1, %s726_s11 }
  0x17   : > { %p44_p10 = scmp.eq.s32.totalorder %s43_s27, 0  ;;  %p114_p11 = scmp.ne.s32.totalorder %s726_s11, %s722_s10 }
  0x18   : > { %s845_s29 = scalar_select %p102_p9, %s726_s11, %s104_s28  }
  0x19   : > { %s848_s30 = scalar_select %p44_p10, %s738_s14, %s46_s21  }
  0x1a   : > { %p115_p12 = scmp.eq.s32.totalorder %s459_s18, 1  ;;  %p120_p13 = scmp.ne.s32.totalorder %s722_s10, %s718_s9 }
  0x1b   : > { %p121_p0 = scmp.eq.s32.totalorder %s460_s19, 1  ;;  %p497_p4 = scmp.lt.s32.totalorder %s750_s17, 2 }
  0x1c   : > { %p854_p1 = por %p115_p12, %p114_p11  ;;  %s865_s5 = sand.u32 1, %s738_s14  }
  0x1d   : > { %p859_p3 = por %p121_p0, %p120_p13  ;;  %s464_s6 = sshll.u32 %s822_s22, 7 }
  0x1e   : > { %s463_s7 = sshll.u32 %s865_s5, 3  ;;  %s1032_s0 = sld [smem:[#allocation11_spill]] }
  0x1f   : > { %s145_s19 = scalar_lea.vmem [#allocation2], %s463_s7  ;;  %p874_p5 = pnand %p497_p4, %p831_p6 }
  0x20   : > { %s155_s21 = sshll.u32 %s145_s19, 4  ;;  %p467_p7 = scmp.ge.s32.totalorder %s750_s17, 1  ;;  %s156_s21 = int_to_ptr.vmem [resolvable:$true] %s155_s21 }
  0x21   : > { %p181_p9 = scmp.lt.s32.totalorder %s750_s17, 3  ;;  %s142_s26 = scalar_lea.sflag [#allocation3], %s865_s5 }
  0x22   : > { %p588_p10 = pneg %p874_p5  ;;  %s599_s22 = scalar_lea.vmem %s156_s21, 128 }
  0x23   : > { %p600_p11 = scmp.ne.s32.totalorder %s156_s21, %s599_s22  ;;  %s752_s27 = smov [#allocation2]  }
  0x24   : > { %s153_s18 = scalar_lea.hbm %s1032_s0, %s464_s6  ;;  %s604_s23 = sshll.u32 %s752_s27, 4  ;;  %s605_s23 = int_to_ptr.vmem [resolvable:$false] %s604_s23 }
  0x25   : > { %p602_p12 = pnand %p600_p11, %p588_p10  ;;  %s606_s28 = scalar_lea.vmem %s605_s23, 256 }
  0x26   : > { %p607_p6 = scmp.lt.s32.totalorder %s156_s21, %s605_s23  ;;  %p608_p0 = scmp.lt.s32.totalorder %s606_s28, %s599_s22 }
  0x27   : > { %p603_p13 = pneg %p602_p12 }
  0x28   : > { %p609_p4 = por %p608_p0, %p607_p6 }
  0x2a   : > { %p610_p2 = pnand %p609_p4, %p603_p13 }
  0x2c   : > { %613 = shalt.err (!%p610_p2)
}
  0x2d   : > { %489 = dma.hbm_to_vmem [thread:$0]  (!%p874_p5), %s153_s18, 128, %s156_s21, %s142_s26  }
  0x2e   : > { %p892_p11 = pnand %p467_p7, %p181_p9  ;;  %s174_s22 = scalar_lea.hbm %s1025_s1, %s464_s6 }
  0x2f   : > { %s166_s27 = scalar_lea.vmem [#allocation5], %s463_s7  ;;  %s163_s28 = scalar_lea.sflag [#allocation6], %s865_s5 }
  0x30   : > { %s176_s23 = sshll.u32 %s166_s27, 4  ;;  %s753_s18 = smov [#allocation5]   ;;  %s177_s23 = int_to_ptr.vmem [resolvable:$true] %s176_s23 }
  0x31   : > { %s627_s0 = scalar_lea.vmem %s177_s23, 128  ;;  %s632_s21 = sshll.u32 %s753_s18, 4  ;;  %s633_s21 = int_to_ptr.vmem [resolvable:$false] %s632_s21 }
  0x32   : > { %p628_p2 = scmp.ne.s32.totalorder %s177_s23, %s627_s0  ;;  %s634_s26 = scalar_lea.vmem %s633_s21, 256 }
  0x33   : > { %p635_p7 = scmp.lt.s32.totalorder %s177_s23, %s633_s21  ;;  %p636_p9 = scmp.lt.s32.totalorder %s634_s26, %s627_s0 }
  0x34   : > { %p630_p12 = pnand %p628_p2, %p588_p10 }
  0x35   : > { %p637_p6 = por %p636_p9, %p635_p7 }
  0x36   : > { %p631_p13 = pneg %p630_p12 }
  0x38   : > { %p638_p0 = pnand %p637_p6, %p631_p13 }
  0x3a   : > { %641 = shalt.err (!%p638_p0)
}
  0x3b   : > { %492 = dma.hbm_to_vmem [thread:$0]  (!%p874_p5), %s174_s22, 128, %s177_s23, %s163_s28  }
  0x3c   : > { %185 = sbr.rel (%p892_p11) target bundleno = 207 (0xcf), region = 28  ;;  %s187_s5 = sand.u32 (!%p892_p11), 1, %s734_s13  }
  0x3d   : > { %s468_s6 = sshll.u32 (!%p892_p11), %s187_s5, 3  ;;  %s188_s7 = scalar_lea.sflag (!%p892_p11), [#allocation3], %s187_s5 }
  0x3e   : > { %s908_s12 = scalar_lea.vmem (!%p892_p11), [#allocation2], %s468_s6 }
  0x41   : > { %705 = dma.done.wait (%p836_p8), %s188_s7, 128  }
  0x42   : > { %707 = vsyncadd (%p836_p8), %s188_s7, 4294967168  ;;  %s197_s0 = scalar_lea.sflag [#allocation6], %s187_s5  ;;  %s914_s19 = scalar_lea.vmem [#allocation5], %s468_s6 }
  0x43   : > { %709 = dma.done.wait (%p836_p8), %s197_s0, 128  }
  0x44   : > { %711 = vsyncadd (%p836_p8), %s197_s0, 4294967168  ;;  %s223_s24 = sand.u32 1, %s722_s10   ;;  %s471_s8 = sshll.u32 %s742_s15, 3  ;;  %v754_v0 = vmov 0.0  }
  0x45   : > { %s470_s22 = sshll.u32 %s223_s24, 5  ;;  %s926_s27 = sadd.s32 8, %s471_s8 }
  0x46   : > { %s928_s23 = scalar_lea.vmem [#allocation7], %s470_s22  ;;  %p472_p8 = scmp.gt.s32.totalorder %s926_s27, 16 }
  0x47   : > { %236 = vst [vmem:[%s928_s23] sm:$0xff] %v754_v0  ;;  %237 = vst [vmem:[%s928_s23 + $0x8] sm:$0xff] %v754_v0 }
  0x48   : > { %238 = vst [vmem:[%s928_s23 + $0x10] sm:$0xff] %v754_v0  ;;  %239 = vst [vmem:[%s928_s23 + $0x18] sm:$0xff] %v754_v0  ;;  %246 = sbr.rel (%p472_p8) target bundleno = 123 (0x7b), region = 44 }
  0x4d   : > { %v247_v1 = vld [vmem:[%s908_s12] sm:$0xff]  ;;  %v248_v3 = vld [vmem:[%s914_s19] sm:$0xff] }
  0x4e   : > { %v250_v2 = vand.u32 2147483647, %v247_v1  ;;  %v275_v4 = vld [vmem:[%s928_s23 + $0x8] sm:$0xff]  ;;  %vm249_vm0 = vcmp.ge.f32.partialorder %v247_v1, 0.0  ;;  %v259_v12 = vmul.f32 %v248_v3, %v247_v1  ;;  %v271_v19 = vld [vmem:[%s928_s23] sm:$0xff] }
  0x4f   : > { %v277_v5 = vadd.f32 %v275_v4, %v248_v3  ;;  %v258_v14 = vsel %vm249_vm0, %v247_v1, 0.0  ;;  %v279_v23 = vld [vmem:[%s928_s23 + $0x10] sm:$0xff]  ;;  %v284_v27 = vld [vmem:[%s928_s23 + $0x18] sm:$0xff] }
  0x50   : > { %v251_v6 = vsub.f32 0.0, %v250_v2  ;;  %v260_v20 = vsub.f32 %v258_v14, %v259_v12 }
  0x51   : > { %278 = vst [vmem:[%s928_s23 + $0x8] sm:$0xff] %v277_v5 }
  0x52   : > { %v252_v7 = vmul.f32 1.442695, %v251_v6 }
  0x54   : > { %574 = vpow2.f32 %v252_v7 }
  0x61   : > { %v575_v8 = vpop.eup %574 }
  0x62   : > { %v254_v9 = vadd.f32 1.0, %v575_v8  ;;  %v264_v10 = vmul.f32 -0.5, %v575_v8  ;;  %v267_v13 = vand.u32 2147483647, %v575_v8 }
  0x64   : > { %576 = vrcp.f32 %v254_v9  ;;  %v265_v11 = vadd.f32 1.0, %v264_v10  ;;  %vm268_vm1 = vcmp.lt.f32.partialorder %v267_v13, 0.0004427343 }
  0x65   : > { %578 = vlog2.f32 %v254_v9 }
  0x66   : > { %v266_v16 = vmul.f32 %v575_v8, %v265_v11 }
  0x71   : > { %v577_v15 = vpop.eup %576 }
  0x72   : > { %v579_v17 = vpop.eup %578  ;;  %v256_v18 = vmul.f32 %v577_v15, %v575_v8 }
  0x73   : > { %v263_v21 = vmul.f32 0.6931472, %v579_v17 }
  0x74   : > { %v257_v22 = vsel %vm249_vm0, %v577_v15, %v256_v18 }
  0x75   : > { %v273_v24 = vadd.f32 %v271_v19, %v257_v22  ;;  %v280_v25 = vmul.f32 %v257_v22, %v248_v3  ;;  %v269_v26 = vsel %vm268_vm1, %v266_v16, %v263_v21 }
  0x76   : > { %v270_v28 = vadd.f32 %v269_v26, %v260_v20 }
  0x77   : > { %274 = vst [vmem:[%s928_s23] sm:$0xff] %v273_v24  ;;  %v282_v29 = vadd.f32 %v280_v25, %v279_v23 }
  0x78   : > { %v286_v30 = vadd.f32 %v284_v27, %v270_v28 }
  0x79   : > { %283 = vst [vmem:[%s928_s23 + $0x10] sm:$0xff] %v282_v29 }
  0x7a   : > { %287 = vst [vmem:[%s928_s23 + $0x18] sm:$0xff] %v286_v30 }
  0x7b PF: > { %p473_p5 = scmp.le.s32.totalorder %s926_s27, 16 }
  0x7d   : > { %291 = sbr.rel (%p473_p5) target bundleno = 183 (0xb7), region = 48 }
  0x82   : > { %v295_v31 = vlaneseq  ;;  %v297_v32 = vstv %s471_s8  ;;  %v292_v34 = vld [vmem:[%s908_s12] sm:$0xff]  ;;  %v293_v36 = vld [vmem:[%s914_s19] sm:$0xff] }
  0x83   : > { %v328_v37 = vld [vmem:[%s928_s23 + $0x8] sm:$0xff]  ;;  %v324_v55 = vld [vmem:[%s928_s23] sm:$0xff]  ;;  %v332_v59 = vld [vmem:[%s928_s23 + $0x10] sm:$0xff] }
  0x84   : > { %v296_v33 = vshrl.u32 %v295_v31, 7  ;;  %v337_v63 = vld [vmem:[%s928_s23 + $0x18] sm:$0xff] }
  0x86   : > { %v298_v35 = vadd.s32 %v297_v32, %v296_v33 }
  0x88   : > { %vm299_vm2 = vcmp.lt.s32.totalorder %v298_v35, 16 }
  0x89   : > { %v300_v38 = vsel %vm299_vm2, %v292_v34, -10000.0  ;;  %v301_v39 = vsel %vm299_vm2, %v293_v36, 0.0 }
  0x8a   : > { %v303_v40 = vand.u32 2147483647, %v300_v38  ;;  %v330_v41 = vadd.f32 %v328_v37, %v301_v39  ;;  %vm302_vm3 = vcmp.ge.f32.partialorder %v300_v38, 0.0  ;;  %v312_v48 = vmul.f32 %v301_v39, %v300_v38 }
  0x8b   : > { %v311_v50 = vsel %vm302_vm3, %v300_v38, 0.0 }
  0x8c   : > { %v304_v42 = vsub.f32 0.0, %v303_v40  ;;  %331 = vst [vmem:[%s928_s23 + $0x8] sm:$0xff] %v330_v41  ;;  %v313_v56 = vsub.f32 %v311_v50, %v312_v48 }
  0x8e   : > { %v305_v43 = vmul.f32 1.442695, %v304_v42 }
  0x90   : > { %580 = vpow2.f32 %v305_v43 }
  0x9d   : > { %v581_v44 = vpop.eup %580 }
  0x9e   : > { %v307_v45 = vadd.f32 1.0, %v581_v44  ;;  %v317_v46 = vmul.f32 -0.5, %v581_v44  ;;  %v320_v49 = vand.u32 2147483647, %v581_v44 }
  0xa0   : > { %582 = vrcp.f32 %v307_v45  ;;  %v318_v47 = vadd.f32 1.0, %v317_v46  ;;  %vm321_vm4 = vcmp.lt.f32.partialorder %v320_v49, 0.0004427343 }
  0xa1   : > { %584 = vlog2.f32 %v307_v45 }
  0xa2   : > { %v319_v52 = vmul.f32 %v581_v44, %v318_v47 }
  0xad   : > { %v583_v51 = vpop.eup %582 }
  0xae   : > { %v585_v53 = vpop.eup %584  ;;  %v309_v54 = vmul.f32 %v583_v51, %v581_v44 }
  0xaf   : > { %v316_v57 = vmul.f32 0.6931472, %v585_v53 }
  0xb0   : > { %v310_v58 = vsel %vm302_vm3, %v583_v51, %v309_v54 }
  0xb1   : > { %v326_v60 = vadd.f32 %v324_v55, %v310_v58  ;;  %v333_v61 = vmul.f32 %v310_v58, %v301_v39  ;;  %v322_v62 = vsel %vm321_vm4, %v319_v52, %v316_v57 }
  0xb2   : > { %v323_v0 = vadd.f32 %v322_v62, %v313_v56 }
  0xb3   : > { %327 = vst [vmem:[%s928_s23] sm:$0xff] %v326_v60  ;;  %v335_v1 = vadd.f32 %v333_v61, %v332_v59 }
  0xb4   : > { %v339_v2 = vadd.f32 %v337_v63, %v323_v0 }
  0xb5   : > { %336 = vst [vmem:[%s928_s23 + $0x10] sm:$0xff] %v335_v1 }
  0xb6   : > { %340 = vst [vmem:[%s928_s23 + $0x18] sm:$0xff] %v339_v2 }
  0xb7 PF: > { %s479_s25 = sshll.u32 %s742_s15, 9  ;;  %s355_s26 = sshll.u32 %s928_s23, 4  ;;  %s965_s26 = int_to_ptr.vmem [resolvable:$true] %s355_s26 }
  0xb8   : > { %s962_s21 = scalar_lea.hbm %s1026_s2, %s479_s25  ;;  %s969_s5 = scalar_lea.sflag [#allocation4], %s223_s24 }
  0xb9   : > { %s642_s6 = scalar_lea.vmem %s965_s26, 512  ;;  %s755_s15 = smov [#allocation7]  }
  0xba   : > { %p643_p10 = scmp.ne.s32.totalorder %s965_s26, %s642_s6  ;;  %s646_s7 = sshll.u32 %s755_s15, 4  ;;  %s647_s7 = int_to_ptr.vmem [resolvable:$false] %s646_s7 }
  0xbb   : > { %s648_s12 = scalar_lea.vmem %s647_s7, 1024  ;;  %p649_p2 = scmp.lt.s32.totalorder %s965_s26, %s647_s7 }
  0xbc   : > { %p644_p4 = pnand %p643_p10, %p854_p1  ;;  %p650_p12 = scmp.lt.s32.totalorder %s648_s12, %s642_s6 }
  0xbe   : > { %p645_p11 = pneg %p644_p4  ;;  %p651_p13 = por %p650_p12, %p649_p2 }
  0xc0   : > { %p652_p7 = pnand %p651_p13, %p645_p11 }
  0xc2   : > { %655 = shalt.err (!%p652_p7)
}
  0xc3   : > { %s656_s0 = scalar_lea.hbm %s962_s21, 512  ;;  %s660_s8 = scalar_lea.hbm %s1026_s2, 1024 }
  0xc4   : > { %p657_p9 = scmp.ne.s32.totalorder %s962_s21, %s656_s0  ;;  %p661_p8 = scmp.lt.s32.totalorder %s962_s21, %s1026_s2 }
  0xc5   : > { %p662_p5 = scmp.lt.s32.totalorder %s660_s8, %s656_s0 }
  0xc6   : > { %p658_p6 = pnand %p657_p9, %p854_p1 }
  0xc7   : > { %p663_p10 = por %p662_p5, %p661_p8 }
  0xc8   : > { %p659_p0 = pneg %p658_p6 }
  0xca   : > { %p664_p4 = pnand %p663_p10, %p659_p0 }
  0xcc   : > { %667 = shalt.err (!%p664_p4)
}
  0xcd   : > { %s756_s23 = smov 128   ;;  %s757_s25 = smov 8  }
  0xce   : > { %484 = dma.vmem_to_hbm [thread:$0]  (%p854_p1), %s965_s26, 512, %s962_s21, %s969_s5, %s756_s23, %s756_s23, %s757_s25  }
  0xcf PF: > { %s370_s28 = sand.u32 1, %s718_s9   ;;  %p1035_p11 = scmp.ge.s32.totalorder %s750_s17, 2 }
  0xd0   : > { %s371_s18 = scalar_lea.sflag [#allocation4], %s370_s28 }
  0xd1   : > { %p494_p2 = pnand %p1035_p11, %p859_p3 }
  0xd3   : > { %p495_p12 = pneg %p494_p2 }
  0xd5   : > { %713 = dma.done.wait (%p495_p12), %s371_s18, 512  }
  0xd6   : > { %715 = vsyncadd (%p495_p12), %s371_s18, 4294966784  ;;  %s21_s17 = sadd.s32 1, %s750_s17   ;;  %s1036_s9 = smov %s722_s10 }
  0xd7   : > { %p18_p13 = scmp.ge.s32.totalorder %s21_s17, 4   ;;  %s1037_s10 = smov %s726_s11 }
  0xd8   : > { %s1038_s11 = smov %s845_s29  ;;  %s1039_s12 = smov %s734_s13 }
  0xd9   : > { %s1040_s13 = smov %s738_s14  ;;  %s1041_s14 = smov %s848_s30 }
  0xda   : > { %s1042_s15 = smov %s746_s16  ;;  %s1043_s16 = smov %s1045_s20 }
  0xdb   :  { %20 = sbr.rel (!%p18_p13) target bundleno = 12 (0xc), region = 98 }
  0xe0   :  { %376 = vsyncpa [#allocation3], 1 }
  0xe1   :  { %378 = vsyncpa [#allocation3 + $0x1], 1 }
  0xe2   :  { %379 = vsyncpa [#allocation6], 1 }
  0xe3   :  { %381 = vsyncpa [#allocation6 + $0x1], 1 }
  0xe4   :  { %382 = vsyncpa [#allocation4], 1 }
  0xe5   :  { %384 = vsyncpa [#allocation4 + $0x1], 1 }

</bundles_post_ra>
